<compile_context>
chip_gen: v6e
topology: v6e:2x2x1
jax: 0.10.0
libtpu: 0.0.40
codegen_flags: <defaults>
</compile_context>

<pallas_src>
import functools

import jax
import jax.numpy as jnp
from jax.experimental import pallas as pl
from jax.experimental.pallas import tpu as pltpu


def _layernorm_kernel(x_ref, g_ref, b_ref, o_ref,
                      sum_ref, sq_ref, gs_ref, bs_ref, *, total_n, eps):
    phase = pl.program_id(0)   # 0: accumulate stats, 1: normalize
    tile = pl.program_id(1)
    tr = x_ref.shape[0]

    @pl.when(jnp.logical_and(phase == 0, tile == 0))
    def _init():
        sum_ref[...] = jnp.zeros_like(sum_ref)
        sq_ref[...] = jnp.zeros_like(sq_ref)

    @pl.when(phase == 0)
    def _accumulate():
        # Pure VPU adds into (8, pcols) vector partial sums; no XLU reduce,
        # no SMEM scalar sync, per tile.
        xf = x_ref[...].astype(jnp.float32)
        x3 = xf.reshape(tr // 8, 8, -1)
        sum_ref[...] += jnp.sum(x3, axis=0)
        sq_ref[...] += jnp.sum(x3 * x3, axis=0)

    @pl.when(jnp.logical_and(phase == 1, tile == 0))
    def _finalize():
        n = jnp.float32(total_n)
        s = jnp.sum(sum_ref[...])          # single cross-lane reduce
        ss = jnp.sum(sq_ref[...])
        mean = s / n
        # torch.std() default is the unbiased estimator (divide by n - 1).
        var = (ss - n * mean * mean) / (n - 1.0)
        std = jnp.sqrt(jnp.maximum(var, 0.0))
        inv = 1.0 / (std + eps)            # eps added to std, as in the reference
        gsc = g_ref[...] * inv
        gs_ref[...] = gsc                  # g_scaled
        bs_ref[...] = b_ref[...] - mean * gsc   # b_shift

    @pl.when(phase == 1)
    def _apply():
        xf = x_ref[...].astype(jnp.float32)
        o_ref[...] = (xf * gs_ref[...] + bs_ref[...]).astype(o_ref.dtype)


def _round_up(a, b):
    return (a + b - 1) // b * b


def layer_normalization(x, gamma, beta, *, eps=1e-6, vmem_budget_bytes=None):
    """gamma/beta: shape (input_dim,) with input_dim == x.shape[-1]."""
    orig_shape = x.shape
    orig_dtype = x.dtype
    cols = orig_shape[-1]
    x2d = x.reshape(-1, cols)
    rows = x2d.shape[0]
    total_n = rows * cols
    itemsize = jnp.dtype(orig_dtype).itemsize
    sub = max(8, 32 // max(itemsize, 1))   # row granularity: f32 8, bf16 16, int8 32

    # --- Lane-dense repack: pad cols to a power-of-two divisor of 128 (or a
    # multiple of 128), fold rows into the 128-lane axis when cols < 128.
    if cols >= 128:
        pc = _round_up(cols, 128)
        pack = 1
    else:
        pc = 1 << max(0, (cols - 1).bit_length())   # next pow2 >= cols, <= 128
        pack = 128 // pc
    if pc != cols:                                   # zero cols: 0 contribution to stats
        x2d = jnp.pad(x2d, ((0, 0), (0, pc - cols)))
    g = gamma.astype(jnp.float32)
    b = beta.astype(jnp.float32)
    if pc != cols:
        g = jnp.pad(g, (0, pc - cols))
        b = jnp.pad(b, (0, pc - cols))
    rows_p = _round_up(rows, pack)
    if rows_p != rows:                               # zero rows: 0 contribution to stats
        x2d = jnp.pad(x2d, ((0, rows_p - rows), (0, 0)))
    prows = rows_p // pack
    pcols = pc * pack                                # always a multiple of 128
    xp = x2d.reshape(prows, pcols)
    gp = jnp.tile(g.reshape(1, pc), (1, pack))
    bp = jnp.tile(b.reshape(1, pc), (1, pack))

    # --- Generation-aware VMEM budget (buffers = x + out, double-buffered).
    if vmem_budget_bytes is None:
        try:
            vmem_cap = int(pltpu.get_tpu_info().vmem_capacity_bytes)
        except Exception:
            vmem_cap = 64 << 20                      # conservative (v7x-sized)
        if vmem_cap >= (100 << 20):                  # v5e / v6e: 128 MiB per core
            buf_budget, vmem_limit = 32 << 20, 64 << 20
        else:                                        # v7x: 64 MiB per core
            buf_budget, vmem_limit = 12 << 20, 32 << 20
    else:
        buf_budget = int(vmem_budget_bytes)
        vmem_limit = max(32 << 20, 4 * buf_budget)

    bytes_per_row = pcols * itemsize
    if 4 * prows * bytes_per_row <= buf_budget:
        # Residency fast path: one block for both phases -> x read from HBM once.
        tr = _round_up(prows, sub)
    else:
        block_budget = buf_budget // 4               # x + out, each double-buffered
        tr = max(sub, (block_budget // max(bytes_per_row, 1)) // sub * sub)
    prows_pad = _round_up(prows, tr)
    if prows_pad != prows:
        xp = jnp.pad(xp, ((0, prows_pad - prows), (0, 0)))
    num_tiles = prows_pad // tr

    kernel = functools.partial(_layernorm_kernel,
                               total_n=total_n, eps=float(eps))
    grid_spec = pltpu.PrefetchScalarGridSpec(
        num_scalar_prefetch=0,
        grid=(2, num_tiles),                                  # (phase, row tile)
        in_specs=[
            pl.BlockSpec((tr, pcols), lambda p, i: (i, 0)),   # x: row-tiled
            pl.BlockSpec((1, pcols), lambda p, i: (0, 0)),    # gamma: resident
            pl.BlockSpec((1, pcols), lambda p, i: (0, 0)),    # beta: resident
        ],
        # Pin the output to block 0 during phase 0 (i * p == 0) so the stats
        # pass does no HBM writebacks; phase 1 writes each block exactly once.
        out_specs=pl.BlockSpec((tr, pcols), lambda p, i: (i * p, 0)),
        scratch_shapes=[
            pltpu.VMEM((8, pcols), jnp.float32),              # vector sum(x)
            pltpu.VMEM((8, pcols), jnp.float32),              # vector sum(x*x)
            pltpu.VMEM((1, pcols), jnp.float32),              # g_scaled
            pltpu.VMEM((1, pcols), jnp.float32),              # b_shift
        ],
    )
    out = pl.pallas_call(
        kernel,
        out_shape=jax.ShapeDtypeStruct((prows_pad, pcols), orig_dtype),
        grid_spec=grid_spec,
        compiler_params=pltpu.CompilerParams(
            # Global mean/std force a sequential two-phase schedule and the
            # accumulators are per-core, so both axes stay "arbitrary".
            dimension_semantics=("arbitrary", "arbitrary"),
            vmem_limit_bytes=vmem_limit),
    )(xp, gp, bp)

    # Undo packing / padding.
    out = out.reshape(prows_pad * pack, pc)[:rows, :cols]
    return out.reshape(orig_shape)


def _reference(x, gamma, beta, eps):
    mean = jnp.mean(x)
    std = jnp.std(x, ddof=1)              # torch.std default: unbiased
    return gamma * (x - mean) / (std + eps) + beta


if __name__ == "__main__":
    EPS = 1e-6
    key = jax.random.PRNGKey(0)
    kx, kg, kb, kx2, kx3 = jax.random.split(key, 5)

    # Shape consistent with how the module is used inside the encoder: (seq, dim).
    SEQ, DIM = 8, 32
    # Non-zero-mean data to exercise the variance numerics.
    x = 3.0 + 0.5 * jax.random.normal(kx, (SEQ, DIM), jnp.float32)
    # The module initializes gamma/beta with torch.zeros; non-trivial values are
    # used here so the affine path is actually exercised (identical semantics).
    gamma = jax.random.normal(kg, (DIM,), jnp.float32)
    beta = jax.random.normal(kb, (DIM,), jnp.float32)

    out = jax.block_until_ready(layer_normalization(x, gamma, beta, eps=EPS))
    ref = _reference(x, gamma, beta, EPS)
    assert out.shape == x.shape
    assert jnp.allclose(out, ref, atol=1e-4, rtol=1e-4), \
        float(jnp.max(jnp.abs(out - ref)))

    # Module-default parameters (gamma = beta = 0) -> identically zero output.
    zeros = jnp.zeros((DIM,), jnp.float32)
    out0 = jax.block_until_ready(layer_normalization(x, zeros, zeros, eps=EPS))
    assert jnp.allclose(out0, jnp.zeros_like(x))

    # Awkward shape: cols not a divisor of 128, rows not a multiple of the pack
    # factor -> exercises column/row zero-padding paths.
    DIM2 = 48
    x2 = jax.random.normal(kx2, (13, DIM2), jnp.float32) - 1.5
    g2 = jax.random.normal(kg, (DIM2,), jnp.float32)
    b2 = jax.random.normal(kb, (DIM2,), jnp.float32)
    out2 = jax.block_until_ready(layer_normalization(x2, g2, b2, eps=EPS))
    assert jnp.allclose(out2, _reference(x2, g2, b2, EPS), atol=1e-4, rtol=1e-4)

    # Multi-tile two-phase path (budget forced small so the grid really tiles).
    x3 = jax.random.normal(kx3, (256, DIM), jnp.float32)
    out3 = jax.block_until_ready(
        layer_normalization(x3, gamma, beta, eps=EPS, vmem_budget_bytes=64 * 1024))
    assert jnp.allclose(out3, _reference(x3, gamma, beta, EPS),
                        atol=1e-4, rtol=1e-4)

    print("KERNEL_OK")
</pallas_src>

<mosaic_0001>
module attributes {stable_mosaic.version = 11 : i64} {
  func.func @_layernorm_kernel(%arg0: i32, %arg1: i32, %arg2: memref<8x128xf32, #tpu.memory_space<vmem>>, %arg3: memref<1x128xf32, #tpu.memory_space<vmem>>, %arg4: memref<1x128xf32, #tpu.memory_space<vmem>>, %arg5: memref<8x128xf32, #tpu.memory_space<vmem>>, %arg6: memref<8x128xf32, #tpu.memory_space<vmem>>, %arg7: memref<8x128xf32, #tpu.memory_space<vmem>>, %arg8: memref<1x128xf32, #tpu.memory_space<vmem>>, %arg9: memref<1x128xf32, #tpu.memory_space<vmem>>) attributes {dimension_semantics = [#tpu.dimension_semantics<arbitrary>, #tpu.dimension_semantics<arbitrary>], iteration_bounds = array<i64: 2, 1>, scalar_prefetch = 0 : i64, scratch_operands = 4 : i64, tpu.core_type = #tpu.core_type<tc>, window_params = [{transform_indices = @transform_0, window_bounds = array<i64: 8, 128>}, {pipeline_mode = #tpu.pipeline_mode<synchronous>, transform_indices = @transform_1, window_bounds = array<i64: 1, 128>}, {pipeline_mode = #tpu.pipeline_mode<synchronous>, transform_indices = @transform_2, window_bounds = array<i64: 1, 128>}, {transform_indices = @transform_3, window_bounds = array<i64: 8, 128>}]} {
    %c0_i32 = arith.constant 0 : i32
    %0 = arith.cmpi eq, %arg0, %c0_i32 : i32
    %c0_i32_0 = arith.constant 0 : i32
    %1 = arith.cmpi eq, %arg1, %c0_i32_0 : i32
    %2 = arith.andi %0, %1 : i1
    %3 = arith.extui %2 : i1 to i32
    %c0_i32_1 = arith.constant 0 : i32
    %4 = arith.cmpi ne, %3, %c0_i32_1 : i32
    scf.if %4 {
      %cst = arith.constant 0.000000e+00 : f32
      %16 = vector.broadcast %cst : f32 to vector<8x128xf32>
      %c0 = arith.constant 0 : index
      %c0_8 = arith.constant 0 : index
      %17 = vector.load %arg6[%c0, %c0_8] : memref<8x128xf32, #tpu.memory_space<vmem>>, vector<8x128xf32>
      tpu.vector_store %arg6[%c0, %c0_8], %16 {strides = array<i32>} : memref<8x128xf32, #tpu.memory_space<vmem>>, vector<8x128xf32>,
      %cst_9 = arith.constant 0.000000e+00 : f32
      %18 = vector.broadcast %cst_9 : f32 to vector<8x128xf32>
      %c0_10 = arith.constant 0 : index
      %c0_11 = arith.constant 0 : index
      %19 = vector.load %arg7[%c0_10, %c0_11] : memref<8x128xf32, #tpu.memory_space<vmem>>, vector<8x128xf32>
      tpu.vector_store %arg7[%c0_10, %c0_11], %18 {strides = array<i32>} : memref<8x128xf32, #tpu.memory_space<vmem>>, vector<8x128xf32>,
    } else {
    }
    %c0_i32_2 = arith.constant 0 : i32
    %5 = arith.cmpi eq, %arg0, %c0_i32_2 : i32
    %6 = arith.extui %5 : i1 to i32
    %c0_i32_3 = arith.constant 0 : i32
    %7 = arith.cmpi ne, %6, %c0_i32_3 : i32
    scf.if %7 {
      %c0 = arith.constant 0 : index
      %c0_8 = arith.constant 0 : index
      %16 = vector.load %arg2[%c0, %c0_8] : memref<8x128xf32, #tpu.memory_space<vmem>>, vector<8x128xf32>
      %17 = vector.shape_cast %16 : vector<8x128xf32> to vector<1x8x128xf32>
      %c0_9 = arith.constant 0 : index
      %c0_10 = arith.constant 0 : index
      %18 = vector.load %arg6[%c0_9, %c0_10] : memref<8x128xf32, #tpu.memory_space<vmem>>, vector<8x128xf32>
      %cst = arith.constant dense<0.000000e+00> : vector<8x128xf32>
      %19 = vector.multi_reduction <add>, %17, %cst [0] : vector<1x8x128xf32> to vector<8x128xf32>
      %20 = arith.addf %18, %19 : vector<8x128xf32>
      %c0_11 = arith.constant 0 : index
      %c0_12 = arith.constant 0 : index
      %21 = vector.load %arg6[%c0_11, %c0_12] : memref<8x128xf32, #tpu.memory_space<vmem>>, vector<8x128xf32>
      tpu.vector_store %arg6[%c0_11, %c0_12], %20 {strides = array<i32>} : memref<8x128xf32, #tpu.memory_space<vmem>>, vector<8x128xf32>,
      %c0_13 = arith.constant 0 : index
      %c0_14 = arith.constant 0 : index
      %22 = vector.load %arg7[%c0_13, %c0_14] : memref<8x128xf32, #tpu.memory_space<vmem>>, vector<8x128xf32>
      %23 = arith.mulf %17, %17 : vector<1x8x128xf32>
      %cst_15 = arith.constant dense<0.000000e+00> : vector<8x128xf32>
      %24 = vector.multi_reduction <add>, %23, %cst_15 [0] : vector<1x8x128xf32> to vector<8x128xf32>
      %25 = arith.addf %22, %24 : vector<8x128xf32>
      %c0_16 = arith.constant 0 : index
      %c0_17 = arith.constant 0 : index
      %26 = vector.load %arg7[%c0_16, %c0_17] : memref<8x128xf32, #tpu.memory_space<vmem>>, vector<8x128xf32>
      tpu.vector_store %arg7[%c0_16, %c0_17], %25 {strides = array<i32>} : memref<8x128xf32, #tpu.memory_space<vmem>>, vector<8x128xf32>,
    } else {
    }
    %c1_i32 = arith.constant 1 : i32
    %8 = arith.cmpi eq, %arg0, %c1_i32 : i32
    %c0_i32_4 = arith.constant 0 : i32
    %9 = arith.cmpi eq, %arg1, %c0_i32_4 : i32
    %10 = arith.andi %8, %9 : i1
    %11 = arith.extui %10 : i1 to i32
    %c0_i32_5 = arith.constant 0 : i32
    %12 = arith.cmpi ne, %11, %c0_i32_5 : i32
    scf.if %12 {
      %c0 = arith.constant 0 : index
      %c0_8 = arith.constant 0 : index
      %16 = vector.load %arg6[%c0, %c0_8] : memref<8x128xf32, #tpu.memory_space<vmem>>, vector<8x128xf32>
      %17 = vector.shape_cast %16 : vector<8x128xf32> to vector<1x8x128xf32>
      %cst = arith.constant dense<0.000000e+00> : vector<1xf32>
      %18 = vector.multi_reduction <add>, %17, %cst [1, 2] : vector<1x8x128xf32> to vector<1xf32>
      %19 = vector.shape_cast %18 : vector<1xf32> to vector<1x1x1xf32>
      %20 = vector.extract %19[0, 0, 0] : f32 from vector<1x1x1xf32>
      %c0_9 = arith.constant 0 : index
      %c0_10 = arith.constant 0 : index
      %21 = vector.load %arg7[%c0_9, %c0_10] : memref<8x128xf32, #tpu.memory_space<vmem>>, vector<8x128xf32>
      %22 = vector.shape_cast %21 : vector<8x128xf32> to vector<1x8x128xf32>
      %cst_11 = arith.constant dense<0.000000e+00> : vector<1xf32>
      %23 = vector.multi_reduction <add>, %22, %cst_11 [1, 2] : vector<1x8x128xf32> to vector<1xf32>
      %24 = vector.shape_cast %23 : vector<1xf32> to vector<1x1x1xf32>
      %25 = vector.extract %24[0, 0, 0] : f32 from vector<1x1x1xf32>
      %cst_12 = arith.constant 2.560000e+02 : f32
      %26 = arith.divf %20, %cst_12 : f32
      %cst_13 = arith.constant 2.560000e+02 : f32
      %27 = arith.mulf %cst_13, %26 : f32
      %28 = arith.mulf %27, %26 : f32
      %29 = arith.subf %25, %28 : f32
      %cst_14 = arith.constant 2.560000e+02 : f32
      %cst_15 = arith.constant 1.000000e+00 : f32
      %30 = arith.subf %cst_14, %cst_15 : f32
      %31 = arith.divf %29, %30 : f32
      %cst_16 = arith.constant 0.000000e+00 : f32
      %32 = arith.maximumf %31, %cst_16 : f32
      %33 = math.sqrt %32 : f32
      %cst_17 = arith.constant 9.99999997E-7 : f32
      %34 = arith.addf %33, %cst_17 : f32
      %cst_18 = arith.constant 1.000000e+00 : f32
      %35 = arith.divf %cst_18, %34 : f32
      %c0_19 = arith.constant 0 : index
      %c0_20 = arith.constant 0 : index
      %36 = vector.load %arg3[%c0_19, %c0_20] : memref<1x128xf32, #tpu.memory_space<vmem>>, vector<1x128xf32>
      %37 = vector.broadcast %35 : f32 to vector<1x128xf32>
      %38 = arith.mulf %36, %37 : vector<1x128xf32>
      %c0_21 = arith.constant 0 : index
      %c0_22 = arith.constant 0 : index
      %39 = vector.load %arg8[%c0_21, %c0_22] : memref<1x128xf32, #tpu.memory_space<vmem>>, vector<1x128xf32>
      tpu.vector_store %arg8[%c0_21, %c0_22], %38 {strides = array<i32>} : memref<1x128xf32, #tpu.memory_space<vmem>>, vector<1x128xf32>,
      %c0_23 = arith.constant 0 : index
      %c0_24 = arith.constant 0 : index
      %40 = vector.load %arg4[%c0_23, %c0_24] : memref<1x128xf32, #tpu.memory_space<vmem>>, vector<1x128xf32>
      %41 = vector.broadcast %26 : f32 to vector<1x128xf32>
      %42 = arith.mulf %41, %38 : vector<1x128xf32>
      %43 = arith.subf %40, %42 : vector<1x128xf32>
      %c0_25 = arith.constant 0 : index
      %c0_26 = arith.constant 0 : index
      %44 = vector.load %arg9[%c0_25, %c0_26] : memref<1x128xf32, #tpu.memory_space<vmem>>, vector<1x128xf32>
      tpu.vector_store %arg9[%c0_25, %c0_26], %43 {strides = array<i32>} : memref<1x128xf32, #tpu.memory_space<vmem>>, vector<1x128xf32>,
    } else {
    }
    %c1_i32_6 = arith.constant 1 : i32
    %13 = arith.cmpi eq, %arg0, %c1_i32_6 : i32
    %14 = arith.extui %13 : i1 to i32
    %c0_i32_7 = arith.constant 0 : i32
    %15 = arith.cmpi ne, %14, %c0_i32_7 : i32
    scf.if %15 {
      %c0 = arith.constant 0 : index
      %c0_8 = arith.constant 0 : index
      %16 = vector.load %arg2[%c0, %c0_8] : memref<8x128xf32, #tpu.memory_space<vmem>>, vector<8x128xf32>
      %c0_9 = arith.constant 0 : index
      %c0_10 = arith.constant 0 : index
      %17 = vector.load %arg8[%c0_9, %c0_10] : memref<1x128xf32, #tpu.memory_space<vmem>>, vector<1x128xf32>
      %18 = vector.broadcast %17 : vector<1x128xf32> to vector<8x128xf32>
      %19 = arith.mulf %16, %18 : vector<8x128xf32>
      %c0_11 = arith.constant 0 : index
      %c0_12 = arith.constant 0 : index
      %20 = vector.load %arg9[%c0_11, %c0_12] : memref<1x128xf32, #tpu.memory_space<vmem>>, vector<1x128xf32>
      %21 = vector.broadcast %20 : vector<1x128xf32> to vector<8x128xf32>
      %22 = arith.addf %19, %21 : vector<8x128xf32>
      %c0_13 = arith.constant 0 : index
      %c0_14 = arith.constant 0 : index
      %23 = vector.load %arg5[%c0_13, %c0_14] : memref<8x128xf32, #tpu.memory_space<vmem>>, vector<8x128xf32>
      tpu.vector_store %arg5[%c0_13, %c0_14], %22 {strides = array<i32>} : memref<8x128xf32, #tpu.memory_space<vmem>>, vector<8x128xf32>,
    } else {
    }
    return
  }
  func.func @transform_0(%arg0: i32, %arg1: i32) -> (i32, i32) {
    %c0_i32 = arith.constant 0 : i32
    %c0_i32_0 = arith.constant 0 : i32
    return %arg1, %c0_i32 : i32, i32
  }
  func.func @transform_1(%arg0: i32, %arg1: i32) -> (i32, i32) {
    %c0_i32 = arith.constant 0 : i32
    %c0_i32_0 = arith.constant 0 : i32
    %c0_i32_1 = arith.constant 0 : i32
    return %c0_i32, %c0_i32_0 : i32, i32
  }
  func.func @transform_2(%arg0: i32, %arg1: i32) -> (i32, i32) {
    %c0_i32 = arith.constant 0 : i32
    %c0_i32_0 = arith.constant 0 : i32
    %c0_i32_1 = arith.constant 0 : i32
    return %c0_i32, %c0_i32_0 : i32, i32
  }
  func.func @transform_3(%arg0: i32, %arg1: i32) -> (i32, i32) {
    %0 = arith.muli %arg1, %arg0 : i32
    %c0_i32 = arith.constant 0 : i32
    %c0_i32_0 = arith.constant 0 : i32
    return %0, %c0_i32 : i32, i32
  }
}

</mosaic_0001>

<bundles_post_ra>
// kernel: tpu_custom_call.1
= control target key start
LH: loop header
LB: loop body
LE: loop exit
PB: predicated region body
PF: predicated region fallthrough
CT: control target
= control target key end

     0   :  { %8 = vsyncpa [#allocation7], 0  ;;  %s637_s0 = inlined_call_operand.hbm [shape: f32[8,128], index: 0, kind: input, shape index: {}]   ;;  %s638_s1 = inlined_call_operand.vmem [shape: f32[1,128], index: 1, kind: input, shape index: {}]   ;;  %s639_s2 = inlined_call_operand.vmem [shape: f32[1,128], index: 2, kind: input, shape index: {}]   ;;  %s640_s3 = inlined_call_operand.hbm [shape: f32[8,128], index: 3, kind: output, shape index: {}]  }
   0x1   :  { %9 = vsyncpa [#allocation8], 0 }
   0x2   :  { %11 = vsyncpa [#allocation8 + $0x1], 0  ;;  %s552_s12 = smov 0   ;;  %s554_s13 = smov 0  }
   0x3   :  { %s556_s14 = smov 0  }
   0x4 LB: > { %s367_s15 = sadd.s32 4294967295, %s526_s14   ;;  %s368_s16 = sadd.s32 4294967294, %s526_s14   ;;  %s526_s14 = sphi %s556_s14, %s17_s14   ;;  %s522_s13 = sphi %s554_s13, %s645_s13   ;;  %s518_s12 = sphi %s552_s12, %s644_s12  }
   0x5   : > { %s29_s17 = sadd.s32 1, %s522_s13  ;;  %p369_p0 = scmp.ge.s32.totalorder %s526_s14, 1 }
   0x6   : > { %p31_p1 = scmp.ge.s32.totalorder %s29_s17, 2  ;;  %p130_p2 = scmp.lt.s32.totalorder %s526_s14, 3 }
   0x7   : > { %p574_p3 = scmp.eq.s32.totalorder %s367_s15, 0  ;;  %s528_s20 = smov [#allocation6]  }
   0x8   : > { %s647_s17 = smov (%p31_p1, %s29_s17), 0  ;;  %p580_p4 = pnand %p369_p0, %p130_p2 }
   0x9   : > { %s145_s21 = sshll.u32 %s528_s20, 4  ;;  %s146_s21 = int_to_ptr.vmem [resolvable:$true] %s145_s21 }
   0xa   : > { %p401_p5 = pneg %p580_p4  ;;  %s457_s22 = scalar_lea.vmem %s146_s21, 128 }
   0xb   : > { %p458_p8 = scmp.ne.s32.totalorder %s146_s21, %s457_s22  ;;  %p465_p11 = scmp.lt.s32.totalorder %s146_s21, %s146_s21 }
   0xc   : > { %p402_p6 = pnand %p574_p3, %p401_p5  ;;  %p466_p12 = scmp.lt.s32.totalorder %s457_s22, %s457_s22 }
   0xe   : > { %p448_p7 = pneg %p402_p6  ;;  %p467_p13 = por %p466_p12, %p465_p11 }
  0x10   : > { %p460_p9 = pnand %p458_p8, %p448_p7 }
  0x12   : > { %p461_p10 = pneg %p460_p9 }
  0x14   : > { %p468_p0 = pnand %p467_p13, %p461_p10 }
  0x16   : > { %471 = shalt.err (!%p468_p0)
}
  0x17   : > { %404 = dma.hbm_to_vmem [thread:$0]  (!%p402_p6), %s637_s0, 128, %s146_s21, [#allocation7]  }
  0x18   : > { %164 = sbr.rel (%p580_p4) target bundleno = 436 (0x1b4), region = 32 }
  0x1d   : > { %509 = dma.done.wait (%p574_p3), [#allocation7], 128  }
  0x1e   : > { %511 = vsyncadd (%p574_p3), [#allocation7], 4294967168  ;;  %p184_p1 = scmp.eq.s32.totalorder %s518_s12, 0 }
  0x1f   : > { %v529_v0 = vmov (%p184_p1), 0.0  }
  0x20   : > { %189 = sbr.rel (!%p184_p1) target bundleno = 37 (0x25), region = 40  ;;  %190 = vst [vmem:[#allocation2] sm:$0xff] (%p184_p1), %v529_v0  ;;  %191 = vst [vmem:[#allocation3] sm:$0xff] (%p184_p1), %v529_v0 }
  0x25 PF: > { %p374_p2 = scmp.ne.s32.totalorder %s518_s12, 0 }
  0x27   : > { %194 = sbr.rel (%p374_p2) target bundleno = 50 (0x32), region = 44 }
  0x2c   : > { %v195_v1 = vld [vmem:[#allocation6] sm:$0xff]  ;;  %v196_v2 = vld [vmem:[#allocation2] sm:$0xff]  ;;  %v200_v3 = vld [vmem:[#allocation3] sm:$0xff] }
  0x2d   : > { %v198_v4 = vadd.f32 %v196_v2, %v195_v1  ;;  %v201_v5 = vmul.f32 %v195_v1, %v195_v1 }
  0x2f   : > { %199 = vst [vmem:[#allocation2] sm:$0xff] %v198_v4  ;;  %v203_v6 = vadd.f32 %v201_v5, %v200_v3 }
  0x31   : > { %204 = vst [vmem:[#allocation3] sm:$0xff] %v203_v6 }
  0x32 PF: > { %p205_p3 = scmp.eq.s32.totalorder %s518_s12, 1 }
  0x33   : > { %s530_s5 = smov (%p205_p3), 0.0   ;;  %v253_v31 = vld [vmem:[%s638_s1] sm:$0x1] (%p205_p3) }
  0x34   : > { %209 = sbr.rel (!%p205_p3) target bundleno = 410 (0x19a), region = 48  ;;  %v257_v34 = vld [vmem:[%s639_s2] sm:$0x1] (%p205_p3) }
  0x36   : > { %v210_v7 = vld [vmem:[#allocation2] sm:$0xff] (%p205_p3) }
  0x37   : > { %211 = vadd.xlane.f32.xlu0 (%p205_p3), %v210_v7 }
  0x38   : > { %v220_v8 = vld [vmem:[#allocation3] sm:$0xff] (%p205_p3) }
  0x3b   : > { %221 = vadd.xlane.f32.xlu0 %v220_v8 }
  0xc0   : > { %v212_v9 = vpop.xlane.xlu0 %211 }
  0xc1   : > { %v213_v10 = vrot.slane %v212_v9, 4 }
  0xc3   : > { %v214_v11 = vadd.f32 %v213_v10, %v212_v9 }
  0xc4   : > { %v222_v12 = vpop.xlane.xlu0 %221 }
  0xc5   : > { %v215_v13 = vrot.slane %v214_v11, 2  ;;  %v223_v14 = vrot.slane %v222_v12, 4 }
  0xc7   : > { %v224_v15 = vadd.f32 %v223_v14, %v222_v12  ;;  %v216_v16 = vadd.f32 %v215_v13, %v214_v11 }
  0xc9   : > { %v225_v17 = vrot.slane %v224_v15, 2  ;;  %v217_v18 = vrot.slane %v216_v16, 1 }
  0xcb   : > { %v226_v19 = vadd.f32 %v225_v17, %v224_v15  ;;  %v218_v20 = vadd.f32 %v217_v18, %v216_v16 }
  0xcd   : > { %385 = vpush %v218_v20  ;;  %v227_v21 = vrot.slane %v226_v19, 1 }
  0xcf   : > { %v228_v22 = vadd.f32 %v227_v21, %v226_v19 }
  0xd1   : > { %387 = vpush %v228_v22 }
  0xfe   : > { %s386_s25 = spop %385 }
  0xff   : > { %s600_s26 = smul.f32 0.00390625, %s386_s25 }
 0x101   : > { %s233_s27 = smul.f32 256.0, %s600_s26  ;;  %v258_v35 = vstv %s600_s26 }
 0x102   : > { %s388_s29 = spop %387 }
 0x103   : > { %s234_s28 = smul.f32 %s233_s27, %s600_s26 }
 0x105   : > { %s235_s30 = ssub.f32 %s388_s29, %s234_s28 }
 0x107   : > { %s238_s4 = smul.f32 0.003921569, %s235_s30 }
 0x109   : > { %s239_s6 = smax.f32 %s530_s5, %s238_s4 }
 0x10a   : > { %v240_v23 = vstv %s239_s6 }
 0x10b   : > { %442 = vrsqrt.f32 %v240_v23  ;;  %vm243_vm0 = vcmp.eq.f32.partialorder %v240_v23, inf  ;;  %v246_v26 = vand.u32 2147483648, %v240_v23  ;;  %vm245_vm1 = vcmp.eq.f32.partialorder %v240_v23, 0.0 }
 0x118   : > { %v443_v24 = vpop.eup %442 }
 0x119   : > { %v242_v25 = vmul.f32 %v443_v24, %v240_v23 }
 0x11b   : > { %v244_v27 = vsel %vm243_vm0, %v240_v23, %v242_v25 }
 0x11c   : > { %v247_v28 = vsel %vm245_vm1, %v246_v26, %v244_v27 }
 0x11d   : > { %389 = vpush %v247_v28 }
 0x14e   : > { %s390_s7 = spop %389 }
 0x14f   : > { %s249_s8 = sadd.f32 1e-06, %s390_s7 }
 0x151   : > { %v250_v29 = vstv %s249_s8 }
 0x152   : > { %444 = vrcp.f32 %v250_v29 }
 0x15f   : > { %v445_v30 = vpop.eup %444 }
 0x160   : > { %391 = vpush %v445_v30 }
 0x191   : > { %s392_s11 = spop %391 }
 0x192   : > { %v254_v32 = vstv %s392_s11 }
 0x193   : > { %v255_v33 = vmul.f32 %v254_v32, %v253_v31 }
 0x195   : > { %256 = vst [vmem:[#allocation4] sm:$0x1] %v255_v33  ;;  %v259_v36 = vmul.f32 %v258_v35, %v255_v33 }
 0x197   : > { %v260_v37 = vsub.f32 %v257_v34, %v259_v36 }
 0x199   : > { %261 = vst [vmem:[#allocation5] sm:$0x1] %v260_v37 }
 0x19a PF: > { %p376_p4 = scmp.ne.s32.totalorder %s518_s12, 1 }
 0x19c   : > { %264 = sbr.rel (%p376_p4) target bundleno = 423 (0x1a7), region = 52 }
 0x1a1   : > { %v265_v38 = vld [vmem:[#allocation6] sm:$0xff]  ;;  %v377_v39 = vld [vmem:[#allocation4] ss:$0 sm:$0xff]  ;;  %v378_v40 = vld [vmem:[#allocation5] ss:$0 sm:$0xff] }
 0x1a2   : > { %v273_v41 = vmul.f32 %v377_v39, %v265_v38 }
 0x1a4   : > { %v281_v42 = vadd.f32 %v378_v40, %v273_v41 }
 0x1a6   : > { %282 = vst [vmem:[#allocation9] sm:$0xff] %v281_v42 }
 0x1a7 PF: > { %p614_p5 = scmp.eq.s32.totalorder %s367_s15, 1  ;;  %s531_s21 = smov [#allocation9]  }
 0x1a8   : > { %s298_s22 = sshll.u32 %s531_s21, 4  ;;  %s299_s22 = int_to_ptr.vmem [resolvable:$true] %s298_s22 }
 0x1a9   : > { %s472_s23 = scalar_lea.vmem %s299_s22, 128  ;;  %s478_s12 = scalar_lea.vmem %s299_s22, 256 }
 0x1aa   : > { %p473_p6 = scmp.ne.s32.totalorder %s299_s22, %s472_s23  ;;  %p479_p9 = scmp.lt.s32.totalorder %s299_s22, %s299_s22 }
 0x1ab   : > { %p480_p10 = scmp.lt.s32.totalorder %s478_s12, %s472_s23 }
 0x1ac   : > { %p474_p7 = pnand %p473_p6, %p614_p5 }
 0x1ad   : > { %p481_p11 = por %p480_p10, %p479_p9 }
 0x1ae   : > { %p475_p8 = pneg %p474_p7 }
 0x1b0   : > { %p482_p12 = pnand %p481_p11, %p475_p8 }
 0x1b2   : > { %485 = shalt.err (!%p482_p12)
}
 0x1b3   : > { %398 = dma.vmem_to_hbm [thread:$0]  (%p614_p5), %s299_s22, 128, %s640_s3, [#allocation8]  }
 0x1b4 PF: > { %p412_p13 = scmp.ge.s32.totalorder %s526_s14, 2  ;;  %p413_p0 = scmp.eq.s32.totalorder %s368_s16, 1 }
 0x1b6   : > { %p406_p1 = pnand %p413_p0, %p412_p13 }
 0x1b8   : > { %p407_p2 = pneg %p406_p1 }
 0x1ba   : > { %513 = dma.done.wait (%p407_p2), [#allocation8], 128  }
 0x1bb   : > { %515 = vsyncadd (%p407_p2), [#allocation8], 4294967168  ;;  %s17_s14 = sadd.s32 1, %s526_s14   ;;  %s644_s12 = smov %s522_s13 }
 0x1bc   : > { %p14_p3 = scmp.ge.s32.totalorder %s17_s14, 4   ;;  %s645_s13 = smov %s647_s17 }
 0x1be   :  { %16 = sbr.rel (!%p14_p3) target bundleno = 4 (0x4), region = 86 }
 0x1c3   :  { %316 = vsyncpa [#allocation7], 1 }
 0x1c4   :  { %318 = vsyncpa [#allocation7 + $0x1], 1 }
 0x1c5   :  { %319 = vsyncpa [#allocation8], 1 }
 0x1c6   :  { %321 = vsyncpa [#allocation8 + $0x1], 1 }

</bundles_post_ra>
